<compile_context>
chip_gen: v6e
topology: v6e:2x2x1
jax: 0.10.0
libtpu: 0.0.40
codegen_flags: <defaults>
</compile_context>

<pallas_src>
import functools

import jax
import jax.numpy as jnp
from jax.experimental import pallas as pl
from jax.experimental.pallas import tpu as pltpu


# ----------------------------------------------------------------------------
# Generation-aware tiling configuration
# ----------------------------------------------------------------------------

_TILE_CFG = None


def _tile_config():
    """(TP_target, TK_target, vmem_limit_bytes), chosen from physical VMEM."""
    global _TILE_CFG
    if _TILE_CFG is None:
        vmem = 64 * (1 << 20)
        try:
            info = pltpu.get_tpu_info()
            v = getattr(info, "vmem_capacity_bytes", None)
            if v:
                vmem = int(v)
        except Exception:
            pass
        if vmem >= 100 * (1 << 20):          # v5e / v6e: 128 MiB physical VMEM
            _TILE_CFG = (2048, 1024, 80 * (1 << 20))
        else:                                 # v7x: 64 MiB physical VMEM
            _TILE_CFG = (1024, 1024, 44 * (1 << 20))
    return _TILE_CFG


def _round_up(x, m):
    return ((x + m - 1) // m) * m


def _pick_tk(K, target):
    if K <= target:
        return K
    for tk in range(target, 127, -128):      # multiples of 128 dividing K
        if K % tk == 0:
            return tk
    return K


# ----------------------------------------------------------------------------
# Pallas kernels
# ----------------------------------------------------------------------------

def _conv_mm_kernel(p_ref, w_ref, b_ref, *refs, use_bias, use_lrelu, emit_stats,
                    negative_slope=0.2):
    """Tiled conv-as-matmul with f32 VMEM accumulator.

    Grid = (i over P tiles, k over the K reduction).  Finalize (k == last) adds
    bias, optionally emits per-tile BN column sum / sumsq, applies LeakyReLU and
    stores the (possibly bf16) output tile.
    """
    if emit_stats:
        out_ref, stats_ref, acc_ref = refs
    else:
        out_ref, acc_ref = refs
        stats_ref = None

    k = pl.program_id(1)

    @pl.when(k == 0)
    def _():
        acc_ref[...] = jnp.zeros_like(acc_ref)

    acc_ref[...] += jnp.dot(p_ref[...], w_ref[...],
                            preferred_element_type=jnp.float32)

    @pl.when(k == pl.num_programs(1) - 1)
    def _():
        y = acc_ref[...]
        if use_bias:
            y = y + b_ref[...]                          # (1, OCp) broadcast
        if emit_stats:
            # Per-i-tile partial BN statistics (f32, from the f32 accumulator).
            # NOTE: E[x^2]-E[x]^2 in f32 can lose precision vs a two-pass /
            # Welford scheme for very large activations; acceptable here.
            stats_ref[0, 0:1, :] = jnp.sum(y, axis=0, keepdims=True)
            stats_ref[0, 1:2, :] = jnp.sum(y * y, axis=0, keepdims=True)
        if use_lrelu:
            y = jnp.where(y > 0, y, negative_slope * y)
        out_ref[...] = y.astype(out_ref.dtype)


def _affine_act_kernel(y_ref, scale_ref, shift_ref, out_ref, *,
                       use_lrelu, negative_slope=0.2):
    """Fused BatchNorm apply (y*scale + shift, f32 math) + LeakyReLU."""
    y = y_ref[...].astype(jnp.float32) * scale_ref[...] + shift_ref[...]
    if use_lrelu:
        y = jnp.where(y > 0, y, negative_slope * y)
    out_ref[...] = y.astype(out_ref.dtype)


def _abs_diff_rowsum_kernel(x_ref, xr_ref, out_ref):
    """Per-tile lane-wide partial of sum(|x - xrec|)."""
    out_ref[0, :, :] = jnp.sum(jnp.abs(x_ref[...] - xr_ref[...]),
                               axis=0, keepdims=True)


def _kl_rowsum_kernel(m_ref, lv_ref, out_ref):
    """Per-tile lane-wide partial of 0.5 * sum(mean^2 + exp(logvar) - 1 - logvar)."""
    m = m_ref[...]
    lv = lv_ref[...]
    out_ref[0, :, :] = 0.5 * jnp.sum(m * m + jnp.exp(lv) - 1.0 - lv,
                                     axis=0, keepdims=True)


# ----------------------------------------------------------------------------
# Conv block (Conv2d + train-mode BatchNorm + LeakyReLU) via pallas_call
# ----------------------------------------------------------------------------

def conv2d_block(x_nhwc, w, b, gamma, beta, *, stride, padding,
                 use_bias, use_bn, use_lrelu, bn_eps=1e-5, negative_slope=0.2,
                 out_dtype=jnp.bfloat16):
    """PyTorch-semantics Conv2d (+ train-mode BatchNorm + LeakyReLU(0.2)).

    x_nhwc: [N, H, W, C] (any float dtype); w: PyTorch layout [OC, C, KH, KW].
    Returns [N, OH, OW, OC] in `out_dtype`.
    """
    TP_TARGET, TK_TARGET, VMEM_LIMIT = _tile_config()

    N, H, W, C = x_nhwc.shape
    OC, Cin, KH, KW = w.shape
    assert Cin == C
    # Zero-padded-row correctness for fused BN stats requires bias-free BN layers
    # (always true in the PatchGAN discriminator).
    assert not (use_bn and use_bias)

    OH = (H + 2 * padding - KH) // stride + 1
    OW = (W + 2 * padding - KW) // stride + 1
    P = N * OH * OW
    K = KH * KW * C

    # im2col in NHWC, K ordered (kh, kw, c): contiguous strided slices, bf16.
    xp = jnp.pad(x_nhwc.astype(jnp.bfloat16),
                 ((0, 0), (padding, padding), (padding, padding), (0, 0)))
    cols = []
    for kh in range(KH):
        for kw in range(KW):
            cols.append(xp[:, kh:kh + stride * OH:stride,
                              kw:kw + stride * OW:stride, :])      # [N,OH,OW,C]
    patches = jnp.stack(cols, axis=3).reshape(P, K)                 # bf16 [P, K]

    # Pad P to an aligned tile multiple (zero rows -> zero conv output rows).
    TP = min(TP_TARGET, _round_up(P, 8))
    P_pad = _round_up(P, TP)
    if P_pad != P:
        patches = jnp.pad(patches, ((0, P_pad - P), (0, 0)))

    # Lane-dense OC padding (zero weight columns -> zero outputs).
    OCp = max(128, _round_up(OC, 128))
    wmat = jnp.transpose(w, (2, 3, 1, 0)).reshape(K, OC)            # (kh,kw,c) x OC
    if OCp != OC:
        wmat = jnp.pad(wmat, ((0, 0), (0, OCp - OC)))
        b = jnp.pad(b, (0, OCp - OC))
        gamma = jnp.pad(gamma, (0, OCp - OC), constant_values=1.0)
        beta = jnp.pad(beta, (0, OCp - OC))
    wmat = wmat.astype(jnp.bfloat16)
    bias = b.reshape(1, OCp).astype(jnp.float32)

    TK = _pick_tk(K, TK_TARGET)
    n_i = P_pad // TP
    grid = (n_i, K // TK)

    mm_kernel = functools.partial(
        _conv_mm_kernel,
        use_bias=use_bias,
        use_lrelu=(use_lrelu and not use_bn),
        emit_stats=use_bn,
        negative_slope=negative_slope)

    y_dtype = jnp.bfloat16 if use_bn else out_dtype
    out_shapes = [jax.ShapeDtypeStruct((P_pad, OCp), y_dtype)]
    out_specs = [pl.BlockSpec((TP, OCp), lambda i, k: (i, 0))]
    if use_bn:
        out_shapes.append(jax.ShapeDtypeStruct((n_i, 2, OCp), jnp.float32))
        out_specs.append(pl.BlockSpec((1, 2, OCp), lambda i, k: (i, 0, 0)))

    results = pl.pallas_call(
        mm_kernel,
        out_shape=tuple(out_shapes),
        grid_spec=pltpu.PrefetchScalarGridSpec(
            num_scalar_prefetch=0,
            grid=grid,
            in_specs=[pl.BlockSpec((TP, TK), lambda i, k: (i, k)),
                      pl.BlockSpec((TK, OCp), lambda i, k: (k, 0)),
                      pl.BlockSpec((1, OCp), lambda i, k: (0, 0))],
            out_specs=tuple(out_specs),
            scratch_shapes=[pltpu.VMEM((TP, OCp), jnp.float32)]),
        compiler_params=pltpu.CompilerParams(
            dimension_semantics=("parallel", "arbitrary"),
            vmem_limit_bytes=VMEM_LIMIT),
    )(patches, wmat, bias)
    y = results[0]

    if use_bn:
        stats = results[1]
        cnt = float(P)                                  # real rows, not padded
        stat = jnp.sum(stats, axis=0)                   # (2, OCp) over i-tiles
        mean = stat[0:1, :] / cnt
        var = jnp.maximum(stat[1:2, :] / cnt - mean * mean, 0.0)  # biased (train)
        inv_std = jax.lax.rsqrt(var + bn_eps)
        scale = gamma.reshape(1, OCp).astype(jnp.float32) * inv_std
        shift = beta.reshape(1, OCp).astype(jnp.float32) - mean * scale

        aff_kernel = functools.partial(_affine_act_kernel,
                                       use_lrelu=use_lrelu,
                                       negative_slope=negative_slope)
        y = pl.pallas_call(
            aff_kernel,
            out_shape=jax.ShapeDtypeStruct((P_pad, OCp), out_dtype),
            grid_spec=pltpu.PrefetchScalarGridSpec(
                num_scalar_prefetch=0,
                grid=(n_i,),
                in_specs=[pl.BlockSpec((TP, OCp), lambda i: (i, 0)),
                          pl.BlockSpec((1, OCp), lambda i: (0, 0)),
                          pl.BlockSpec((1, OCp), lambda i: (0, 0))],
                out_specs=pl.BlockSpec((TP, OCp), lambda i: (i, 0))),
            compiler_params=pltpu.CompilerParams(
                dimension_semantics=("parallel",),
                vmem_limit_bytes=VMEM_LIMIT),
        )(y, scale, shift)

    y = y[:P, :OC]
    return y.reshape(N, OH, OW, OC)


# ----------------------------------------------------------------------------
# Tiled total-sum reductions
# ----------------------------------------------------------------------------

def _tiled_total_reduce(kernel, arrays):
    """Grid-tiled total sum; per-tile lane-wide partials (fully parallel grid),
    final cross-lane reduce in XLA. Returns a scalar f32."""
    total = int(arrays[0].size)
    C = 128
    R = -(-total // C)
    TR = min(256, _round_up(max(R, 1), 8))
    R_pad = _round_up(R, TR)
    padded_total = R_pad * C
    flat = []
    for a in arrays:
        f = jnp.ravel(a).astype(jnp.float32)
        if padded_total != total:
            f = jnp.pad(f, (0, padded_total - total))   # zero pad contributes 0
        flat.append(f.reshape(R_pad, C))
    n_tiles = R_pad // TR
    partials = pl.pallas_call(
        kernel,
        out_shape=jax.ShapeDtypeStruct((n_tiles, 1, C), jnp.float32),
        grid_spec=pltpu.PrefetchScalarGridSpec(
            num_scalar_prefetch=0,
            grid=(n_tiles,),
            in_specs=[pl.BlockSpec((TR, C), lambda i: (i, 0)) for _ in flat],
            out_specs=pl.BlockSpec((1, 1, C), lambda i: (i, 0, 0))),
        compiler_params=pltpu.CompilerParams(dimension_semantics=("parallel",)),
    )(*flat)
    return jnp.sum(partials)


def rec_total_sum(inputs, recons):
    return _tiled_total_reduce(_abs_diff_rowsum_kernel, [inputs, recons])


def kl_total_sum(mean, logvar):
    return _tiled_total_reduce(_kl_rowsum_kernel, [mean, logvar])


# ----------------------------------------------------------------------------
# Module glue (parameter setup, loss assembly) in plain JAX
# ----------------------------------------------------------------------------

def adopt_weight(weight, global_step, threshold=0, value=0.0):
    return weight if global_step >= threshold else value


def hinge_d_loss(logits_real, logits_fake):
    loss_real = jnp.mean(jnp.maximum(1.0 - logits_real, 0.0))
    loss_fake = jnp.mean(jnp.maximum(1.0 + logits_fake, 0.0))
    return 0.5 * (loss_real + loss_fake)


def vanilla_d_loss(logits_real, logits_fake):
    return 0.5 * (jnp.mean(jax.nn.softplus(-logits_real)) +
                  jnp.mean(jax.nn.softplus(logits_fake)))


class DiagonalGaussian:
    """Mirror of ldm DiagonalGaussianDistribution (deterministic parts only)."""

    def __init__(self, parameters):
        mean, logvar = jnp.split(parameters.astype(jnp.float32), 2, axis=1)
        self.mean = mean
        self.logvar = jnp.clip(logvar, -30.0, 20.0)
        self.std = jnp.exp(0.5 * self.logvar)
        self.var = jnp.exp(self.logvar)


def _init_nlayer_discriminator(key, input_nc=3, ndf=64, n_layers=3):
    """PatchGAN NLayerDiscriminator params, weights_init-style (normal(0,0.02)
    convs, normal(1,0.02) BN gammas, zero biases — deterministic, synthetic)."""
    keys = iter(jax.random.split(key, 4 * (n_layers + 2)))

    def convw(oc, ic):
        return 0.02 * jax.random.normal(next(keys), (oc, ic, 4, 4), jnp.float32)

    layers = []
    layers.append(dict(w=convw(ndf, input_nc), b=jnp.zeros((ndf,), jnp.float32),
                       gamma=jnp.ones((ndf,), jnp.float32),
                       beta=jnp.zeros((ndf,), jnp.float32),
                       stride=2, padding=1, use_bias=True, use_bn=False, use_lrelu=True))
    nf_mult = 1
    for n in range(1, n_layers + 1):
        nf_mult_prev, nf_mult = nf_mult, min(2 ** n, 8)
        ic, oc = ndf * nf_mult_prev, ndf * nf_mult
        stride = 2 if n < n_layers else 1
        gamma = 1.0 + 0.02 * jax.random.normal(next(keys), (oc,), jnp.float32)
        layers.append(dict(w=convw(oc, ic), b=jnp.zeros((oc,), jnp.float32),
                           gamma=gamma, beta=jnp.zeros((oc,), jnp.float32),
                           stride=stride, padding=1,
                           use_bias=False, use_bn=True, use_lrelu=True))
    layers.append(dict(w=convw(1, ndf * nf_mult), b=jnp.zeros((1,), jnp.float32),
                       gamma=jnp.ones((1,), jnp.float32),
                       beta=jnp.zeros((1,), jnp.float32),
                       stride=1, padding=1, use_bias=True, use_bn=False, use_lrelu=False))
    return layers


class LPIPSWithDiscriminatorPallas:
    def __init__(self, disc_start, logvar_init=0.0, kl_weight=1.0, pixelloss_weight=1.0,
                 disc_num_layers=3, disc_in_channels=3, disc_factor=1.0, disc_weight=1.0,
                 perceptual_weight=1.0, use_actnorm=False, disc_conditional=False,
                 disc_loss='hinge', is_3d=False, seed=0):
        assert disc_loss in ['hinge', 'vanilla']
        self.kl_weight = kl_weight
        self.pixel_weight = pixelloss_weight
        self.perceptual_weight = perceptual_weight
        self.logvar = jnp.asarray(logvar_init, jnp.float32)
        self.disc_params = _init_nlayer_discriminator(
            jax.random.PRNGKey(seed), input_nc=disc_in_channels, n_layers=disc_num_layers)
        self.discriminator_iter_start = disc_start
        self.disc_loss = hinge_d_loss if disc_loss == 'hinge' else vanilla_d_loss
        self.disc_factor = disc_factor
        self.discriminator_weight = disc_weight
        self.disc_conditional = disc_conditional

    def discriminator(self, x_nchw):
        # Single NCHW->NHWC transpose + bf16 cast at entry; activations stay
        # NHWC/bf16 between layers; final prediction conv emits f32 logits.
        x = jnp.transpose(x_nchw, (0, 2, 3, 1)).astype(jnp.bfloat16)
        n = len(self.disc_params)
        for li, layer in enumerate(self.disc_params):
            od = jnp.float32 if li == n - 1 else jnp.bfloat16
            x = conv2d_block(x, out_dtype=od, **layer)
        return x.astype(jnp.float32)                    # [N, OH, OW, 1]

    def forward(self, inputs, reconstructions, posteriors, optimizer_idx, global_step,
                last_layer=None, cond=None, split='train', weights=0.0005,
                proj2p=None, gan_pure=False, need_g_loss_log=True):
        # ------- proj2p auxiliary (logged) losses -------
        mask = jnp.array([[2., 1., 1., 0, 0, 0], [1., 2., 1., 0, 0, 0],
                          [1., 1., 2., 0, 0, 0], [0, 0, 0, 2., 0, 0],
                          [0, 0, 0, 0, 2., 0], [0, 0, 0, 0, 0, 2.]], jnp.float32)
        sum_mask = jnp.sum(mask)
        mask = mask.reshape(1, -1) / sum_mask * 6 ** 2

        aux = {}
        if proj2p is not None and len(proj2p) == 2:
            b = proj2p[1].shape[0]
            label = proj2p[1].reshape(b, -1)
            label_i = 1.0 / label
            bad = jnp.any(jnp.isnan(label_i)) | jnp.any(jnp.isinf(label_i))
            label_i = jnp.where(bad, jnp.where(jnp.isinf(label_i), 0.1, label_i), label_i)
            diff = proj2p[0] - label
            t = jnp.abs(diff * label_i) * mask
            bad2 = jnp.any(jnp.isnan(t)) | jnp.any(jnp.isinf(t))
            aux['cls_loss_l1_r'] = jnp.where(
                bad2, jnp.mean(jnp.abs(diff / 0.1) * mask), jnp.mean(t))
            aux['cls_loss_l2'] = jnp.mean(diff ** 2 * mask)
            aux['cls_loss_l1'] = jnp.mean(jnp.abs(diff) * mask)
        elif proj2p is not None and len(proj2p) == 5:
            pred_z_cond, z_cond, pred_cond, recon_cond, label_cond = proj2p
            aux['z_cond_loss_l1'] = jnp.mean(jnp.abs(pred_z_cond - z_cond))
            aux['z_cond_loss_l2'] = jnp.mean((pred_z_cond - z_cond) ** 2)
            label_cond_i = 1.0 / label_cond
            badc = jnp.any(jnp.isnan(label_cond_i)) | jnp.any(jnp.isinf(label_cond_i))
            label_cond_i = jnp.where(
                badc, jnp.where(jnp.isinf(label_cond_i), 0.001, label_cond_i), label_cond_i)
            aux['rec_cond_loss_l1'] = jnp.mean(jnp.abs(recon_cond - label_cond))
            aux['rec_cond_loss_l2'] = jnp.mean((recon_cond - label_cond) ** 2)
            aux['rec_cond_loss_l1_r'] = jnp.mean(jnp.abs((recon_cond - label_cond) * label_cond_i))
            aux['pred_cond_loss_l1'] = jnp.mean(jnp.abs(pred_cond - label_cond))
            aux['pred_cond_loss_l2'] = jnp.mean((pred_cond - label_cond) ** 2)
            aux['pred_cond_loss_l1_r'] = jnp.mean(jnp.abs((pred_cond - label_cond) * label_cond_i))

        # ------- reconstruction / NLL / KL (Pallas hot path) -------
        N = inputs.shape[0]
        xrec = reconstructions[:N]
        if self.perceptual_weight > 0:
            # TODO(synk): LPIPS (pretrained VGG16 perceptual net) has no in-script
            # equivalent; instantiate with perceptual_weight=0 for this synthetic kernel.
            raise NotImplementedError("LPIPS perceptual loss not available in-script")

        rec_sum = rec_total_sum(inputs.astype(jnp.float32), xrec.astype(jnp.float32))
        total_elems = float(inputs.size)
        lv = self.logvar
        # nll = rec * exp(-logvar) + logvar (logvar is a scalar parameter)
        nll_sum = rec_sum * jnp.exp(-lv) + lv * total_elems
        nll_loss = nll_sum / N
        if weights is not None:
            # TODO(synk): per-element weight tensors are not supported on this
            # reduced path; scalar weights only (matches the common call-site).
            weighted_nll_loss = (weights * nll_sum) / N
        else:
            weighted_nll_loss = nll_loss
        rec_loss_mean = rec_sum / total_elems

        kl_loss = kl_total_sum(posteriors.mean, posteriors.logvar) / posteriors.mean.shape[0]

        if optimizer_idx == 0:
            # TODO(synk): calculate_adaptive_weight requires autograd through the
            # external decoder's last layer; using the eval-mode fallback 0.0.
            d_weight_val = 0.0
            disc_factor = adopt_weight(self.disc_factor, global_step,
                                       threshold=self.discriminator_iter_start)
            run_disc = need_g_loss_log or (d_weight_val * float(disc_factor) != 0.0)
            if run_disc:
                if cond is None:
                    assert not self.disc_conditional
                    logits_fake = self.discriminator(reconstructions)
                else:
                    assert self.disc_conditional
                    logits_fake = self.discriminator(
                        jnp.concatenate([reconstructions, cond], axis=1))
                g_loss = -jnp.mean(logits_fake)
            else:
                # Discriminator contributes nothing (d_weight * disc_factor == 0)
                # and g_loss logging was waived: skip the whole PatchGAN pass.
                g_loss = jnp.asarray(0.0, jnp.float32)

            d_weight = jnp.asarray(d_weight_val, jnp.float32)
            if not gan_pure:
                loss = (weighted_nll_loss + self.kl_weight * kl_loss
                        + d_weight * disc_factor * g_loss * 0.01)
            else:
                loss = d_weight * disc_factor * g_loss

            log = {f'{split}/total_loss': loss,
                   f'{split}/logvar': self.logvar,
                   f'{split}/kl_loss': kl_loss,
                   f'{split}/nll_loss': nll_loss,
                   f'{split}/rec_loss': rec_loss_mean,
                   f'{split}/d_weight': d_weight,
                   f'{split}/disc_factor': jnp.asarray(disc_factor, jnp.float32),
                   f'{split}/g_loss': g_loss}
            for k, v in aux.items():
                log[f'{split}/{k}'] = v
            if proj2p is not None and len(proj2p) == 5:
                rec_cond_loss = (aux['rec_cond_loss_l1'] * 0.0 + aux['rec_cond_loss_l2'] * 300.0
                                 + aux['rec_cond_loss_l1_r'] * 0.0)
                z_cond_loss = aux['z_cond_loss_l1'] * 0.5 + aux['z_cond_loss_l2'] * 500
                pred_cond_loss = (aux['pred_cond_loss_l1'] * 0.0 + aux['pred_cond_loss_l2'] * 400.0
                                  + aux['pred_cond_loss_l1_r'] * 0.0)
                loss = loss + rec_cond_loss * 0.0 + z_cond_loss * 0.0 + pred_cond_loss * 0.0
                log[f'{split}/total_loss'] = loss
            return loss, log

        if optimizer_idx == 1:
            inp_d = jax.lax.stop_gradient(inputs)
            rec_d = jax.lax.stop_gradient(reconstructions)
            if cond is not None:
                inp_d = jnp.concatenate([inp_d, cond], axis=1)
                rec_d = jnp.concatenate([rec_d, cond], axis=1)
            if inp_d.shape == rec_d.shape:
                # One discriminator pass on the batched [real; fake] stack.
                logits = self.discriminator(jnp.concatenate([inp_d, rec_d], axis=0))
                logits_real = logits[:inp_d.shape[0]]
                logits_fake = logits[inp_d.shape[0]:]
            else:
                logits_real = self.discriminator(inp_d)
                logits_fake = self.discriminator(rec_d)
            disc_factor = adopt_weight(self.disc_factor, global_step,
                                       threshold=self.discriminator_iter_start)
            g_loss = self.disc_loss(logits_real, logits_fake)
            d_loss = disc_factor * g_loss
            log = {f'{split}/disc_loss': d_loss,
                   f'{split}/logits_real': jnp.mean(logits_real),
                   f'{split}/logits_fake': jnp.mean(logits_fake)}
            return d_loss, log


# ----------------------------------------------------------------------------
# Demo
# ----------------------------------------------------------------------------

if __name__ == "__main__":
    key = jax.random.PRNGKey(0)
    k1, k2, k3, k4, k5 = jax.random.split(key, 5)

    B, C, H, W = 2, 3, 32, 32           # spatial 32 so the 4-layer PatchGAN stays valid
    inputs = jax.random.normal(k1, (B, C, H, W), jnp.float32)
    reconstructions = jax.random.normal(k2, (B, C, H, W), jnp.float32)
    posterior_params = 0.5 * jax.random.normal(k3, (B, 8, 8, 8), jnp.float32)  # mean|logvar
    posteriors = DiagonalGaussian(posterior_params)
    proj_pred = jax.random.normal(k4, (B, 36), jnp.float32)
    proj_label = jnp.abs(jax.random.normal(k5, (B, 6, 6), jnp.float32)) + 0.5
    proj2p = [proj_pred, proj_label]

    loss_mod = LPIPSWithDiscriminatorPallas(
        disc_start=5000, kl_weight=1.0, disc_in_channels=3, disc_num_layers=3,
        perceptual_weight=0.0,   # TODO(synk): LPIPS VGG backbone not reproduced in-script
        disc_loss='hinge', seed=0)

    loss_g, log_g = loss_mod.forward(inputs, reconstructions, posteriors,
                                     optimizer_idx=0, global_step=10000,
                                     proj2p=proj2p, weights=0.0005)
    loss_d, log_d = loss_mod.forward(inputs, reconstructions, posteriors,
                                     optimizer_idx=1, global_step=10000,
                                     proj2p=proj2p, weights=0.0005)

    jax.block_until_ready((loss_g, log_g, loss_d, log_d))
    assert jnp.isfinite(loss_g) and jnp.isfinite(loss_d)
    print("KERNEL_OK")
</pallas_src>

<mosaic_0001>
module attributes {stable_mosaic.version = 11 : i64} {
  func.func @_abs_diff_rowsum_kernel(%arg0: i32, %arg1: memref<48x128xf32, #tpu.memory_space<vmem>>, %arg2: memref<48x128xf32, #tpu.memory_space<vmem>>, %arg3: memref<1x1x128xf32, #tpu.memory_space<vmem>>) attributes {dimension_semantics = [#tpu.dimension_semantics<parallel>], iteration_bounds = array<i64: 1>, scalar_prefetch = 0 : i64, scratch_operands = 0 : i64, tpu.core_type = #tpu.core_type<tc>, window_params = [{transform_indices = @transform_0, window_bounds = array<i64: 48, 128>}, {transform_indices = @transform_1, window_bounds = array<i64: 48, 128>}, {transform_indices = @transform_2, window_bounds = array<i64: 1, 1, 128>}]} {
    %c0 = arith.constant 0 : index
    %c0_0 = arith.constant 0 : index
    %0 = vector.load %arg1[%c0, %c0_0] : memref<48x128xf32, #tpu.memory_space<vmem>>, vector<48x128xf32>
    %c0_1 = arith.constant 0 : index
    %c0_2 = arith.constant 0 : index
    %1 = vector.load %arg2[%c0_1, %c0_2] : memref<48x128xf32, #tpu.memory_space<vmem>>, vector<48x128xf32>
    %2 = arith.subf %0, %1 : vector<48x128xf32>
    %3 = math.absf %2 : vector<48x128xf32>
    %cst = arith.constant dense<0.000000e+00> : vector<128xf32>
    %4 = vector.multi_reduction <add>, %3, %cst [0] : vector<48x128xf32> to vector<128xf32>
    %5 = vector.shape_cast %4 : vector<128xf32> to vector<1x128xf32>
    %c0_3 = arith.constant 0 : index
    %c0_4 = arith.constant 0 : index
    %c0_5 = arith.constant 0 : index
    %6 = vector.load %arg3[%c0_3, %c0_4, %c0_5] : memref<1x1x128xf32, #tpu.memory_space<vmem>>, vector<1x1x128xf32>
    %7 = vector.shape_cast %6 : vector<1x1x128xf32> to vector<1x128xf32>
    %8 = vector.shape_cast %5 : vector<1x128xf32> to vector<1x1x128xf32>
    tpu.vector_store %arg3[%c0_3, %c0_4, %c0_5], %8 {strides = array<i32>} : memref<1x1x128xf32, #tpu.memory_space<vmem>>, vector<1x1x128xf32>,
    return
  }
  func.func @transform_0(%arg0: i32) -> (i32, i32) {
    %c0_i32 = arith.constant 0 : i32
    %c0_i32_0 = arith.constant 0 : i32
    return %arg0, %c0_i32 : i32, i32
  }
  func.func @transform_1(%arg0: i32) -> (i32, i32) {
    %c0_i32 = arith.constant 0 : i32
    %c0_i32_0 = arith.constant 0 : i32
    return %arg0, %c0_i32 : i32, i32
  }
  func.func @transform_2(%arg0: i32) -> (i32, i32, i32) {
    %c0_i32 = arith.constant 0 : i32
    %c0_i32_0 = arith.constant 0 : i32
    %c0_i32_1 = arith.constant 0 : i32
    return %arg0, %c0_i32, %c0_i32_0 : i32, i32, i32
  }
}

</mosaic_0001>

<bundles_post_ra>
// kernel: tpu_custom_call.1
= control target key start
LH: loop header
LB: loop body
LE: loop exit
PB: predicated region body
PF: predicated region fallthrough
CT: control target
= control target key end

     0   :  { %7 = vsyncpa [#allocation3], 0  ;;  %s192_s0 = inlined_call_operand.hbm [shape: f32[48,128], index: 0, kind: input, shape index: {}]   ;;  %s193_s1 = inlined_call_operand.hbm [shape: f32[48,128], index: 1, kind: input, shape index: {}]   ;;  %s194_s2 = inlined_call_operand.hbm [shape: f32[1,1,128], index: 2, kind: output, shape index: {}]  }
   0x1   :  { %8 = vsyncpa [#allocation6], 0 }
   0x2   :  { %9 = vsyncpa [#allocation4], 0  ;;  %s163_s9 = smov [#allocation2]  }
   0x3   :  { %s15_s10 = sshll.u32 %s163_s9, 4  ;;  %s16_s10 = int_to_ptr.vmem [resolvable:$true] %s15_s10 }
   0x4   :  { %s105_s11 = scalar_lea.vmem %s16_s10, 768  ;;  %p110_p1 = scmp.lt.s32.totalorder %s16_s10, %s16_s10 }
   0x5   :  { %p106_p0 = scmp.ne.s32.totalorder %s16_s10, %s105_s11  ;;  %p111_p2 = scmp.lt.s32.totalorder %s105_s11, %s105_s11 }
   0x7   :  { %p112_p3 = por %p111_p2, %p110_p1 }
   0x9   :  { %p113_p4 = pnand %p112_p3, %p106_p0 }
   0xb   :  { %116 = shalt.err (!%p113_p4)
}
   0xc   :  { %s164_s12 = smov 128   ;;  %s165_s13 = smov 8  }
   0xd   :  { %21 = dma.hbm_to_vmem [thread:$0]  %s192_s0, 768, %s16_s10, [#allocation3], %s164_s12, %s164_s12, %s165_s13  }
   0xe   :  { %s166_s16 = smov [#allocation5]  }
   0xf   :  { %s27_s17 = sshll.u32 %s166_s16, 4  ;;  %s28_s17 = int_to_ptr.vmem [resolvable:$true] %s27_s17 }
  0x10   :  { %s125_s18 = scalar_lea.vmem %s28_s17, 768  ;;  %p130_p6 = scmp.lt.s32.totalorder %s28_s17, %s28_s17 }
  0x11   :  { %p126_p5 = scmp.ne.s32.totalorder %s28_s17, %s125_s18  ;;  %p131_p7 = scmp.lt.s32.totalorder %s125_s18, %s125_s18 }
  0x13   :  { %p132_p8 = por %p131_p7, %p130_p6 }
  0x15   :  { %p133_p9 = pnand %p132_p8, %p126_p5 }
  0x17   :  { %136 = shalt.err (!%p133_p9)
}
  0x18   :  { %33 = dma.hbm_to_vmem [thread:$0]  %s193_s1, 768, %s28_s17, [#allocation6], %s164_s12, %s164_s12, %s165_s13  }
  0x19   :  { %157 = dma.done.wait [#allocation3], 768  }
  0x1a   :  { %158 = vsyncadd [#allocation3], 4294966528 }
  0x1b   :  { %159 = dma.done.wait [#allocation6], 768  }
  0x1c   :  { %160 = vsyncadd [#allocation6], 4294966528  ;;  %v40_v0 = vld [vmem:[#allocation2] sm:$0xff]  ;;  %v41_v1 = vld [vmem:[#allocation2 + $0x8] sm:$0xff]  ;;  %s167_s0 = smov [#allocation7]  }
  0x1d   :  { %v42_v2 = vld [vmem:[#allocation2 + $0x10] sm:$0xff]  ;;  %v43_v3 = vld [vmem:[#allocation2 + $0x18] sm:$0xff]  ;;  %v44_v4 = vld [vmem:[#allocation2 + $0x20] sm:$0xff]  ;;  %s82_s1 = sshll.u32 %s167_s0, 4  ;;  %s83_s1 = int_to_ptr.vmem [resolvable:$true] %s82_s1 }
  0x1e   :  { %v46_v5 = vld [vmem:[#allocation5] sm:$0xff]  ;;  %v47_v6 = vld [vmem:[#allocation5 + $0x8] sm:$0xff]  ;;  %v48_v7 = vld [vmem:[#allocation5 + $0x10] sm:$0xff]  ;;  %s137_s21 = scalar_lea.vmem %s83_s1, 16  ;;  %s141_s22 = scalar_lea.vmem %s83_s1, 32 }
  0x1f   :  { %v49_v8 = vld [vmem:[#allocation5 + $0x18] sm:$0xff]  ;;  %v50_v9 = vld [vmem:[#allocation5 + $0x20] sm:$0xff]  ;;  %v52_v10 = vsub.f32 %v40_v0, %v46_v5  ;;  %v53_v11 = vsub.f32 %v41_v1, %v47_v6  ;;  %v54_v12 = vsub.f32 %v42_v2, %v48_v7  ;;  %v51_v14 = vld [vmem:[#allocation5 + $0x28] sm:$0xff]  ;;  %p138_p10 = scmp.ne.s32.totalorder %s83_s1, %s137_s21  ;;  %p142_p11 = scmp.lt.s32.totalorder %s83_s1, %s83_s1 }
  0x20   :  { %v45_v13 = vld [vmem:[#allocation2 + $0x28] sm:$0xff]  ;;  %v55_v15 = vsub.f32 %v43_v3, %v49_v8  ;;  %v56_v16 = vsub.f32 %v44_v4, %v50_v9  ;;  %p143_p12 = scmp.lt.s32.totalorder %s141_s22, %s137_s21 }
  0x21   :  { %v58_v17 = vand.u32 2147483647, %v52_v10  ;;  %v59_v18 = vand.u32 2147483647, %v53_v11  ;;  %v60_v19 = vand.u32 2147483647, %v54_v12  ;;  %v57_v20 = vsub.f32 %v45_v13, %v51_v14 }
  0x22   :  { %v61_v21 = vand.u32 2147483647, %v55_v15  ;;  %v62_v23 = vand.u32 2147483647, %v56_v16  ;;  %p144_p13 = por %p143_p12, %p142_p11 }
  0x23   :  { %v64_v22 = vadd.f32 %v59_v18, %v58_v17  ;;  %v63_v25 = vand.u32 2147483647, %v57_v20 }
  0x24   :  { %p145_p0 = pnand %p144_p13, %p138_p10 }
  0x25   :  { %v65_v24 = vadd.f32 %v64_v22, %v60_v19 }
  0x27   :  { %v66_v26 = vadd.f32 %v65_v24, %v61_v21 }
  0x29   :  { %v67_v27 = vadd.f32 %v66_v26, %v62_v23 }
  0x2b   :  { %v68_v28 = vadd.f32 %v67_v27, %v63_v25 }
  0x2d   :  { %v69_v29 = vrot.slane %v68_v28, 4 }
  0x2f   :  { %v70_v30 = vadd.f32 %v69_v29, %v68_v28 }
  0x31   :  { %v71_v31 = vrot.slane %v70_v30, 2 }
  0x33   :  { %v72_v32 = vadd.f32 %v71_v31, %v70_v30 }
  0x35   :  { %v73_v33 = vrot.slane %v72_v32, 1 }
  0x37   :  { %v74_v34 = vadd.f32 %v73_v33, %v72_v32 }
  0x39   :  { %75 = vst [vmem:[#allocation7] sm:$0x1] %v74_v34 }
  0x3a   :  { %148 = shalt.err (!%p145_p0)
}
  0x3b   :  { %85 = dma.vmem_to_hbm [thread:$0]  %s83_s1, 16, %s194_s2, [#allocation4]  }
  0x3c   :  { %161 = dma.done.wait [#allocation4], 16  }
  0x3d   :  { %162 = vsyncadd [#allocation4], 4294967280 }
  0x3e   :  { %89 = vsyncpa [#allocation3], 1 }
  0x3f   :  { %90 = vsyncpa [#allocation6], 1 }
  0x40   :  { %91 = vsyncpa [#allocation4], 1 }

</bundles_post_ra>
